<compile_context>
chip_gen: v7x
topology: tpu7x:2x2x1
jax: 0.10.0
libtpu: 0.0.40
codegen_flags: <defaults>
</compile_context>

<pallas_src>
import jax
import jax.numpy as jnp
from jax.experimental import pallas as pl
from jax.experimental.pallas import tpu as pltpu


def _round_up(x, m):
    return ((x + m - 1) // m) * m


def _make_sla_kernel(n_valid, tm, mr_pad, mu_pad):
    """Build the row-tile kernel with sizes / masks resolved statically (no prefetch)."""
    need_col_mask = n_valid < mr_pad          # pad cols all live in the last 128-lane block
    need_row_mask = n_valid < mu_pad
    last = mr_pad - 128                        # start of the last 128-wide column block

    def kernel(u_ref, r_ref, ic_ref, w_ref):
        # Impression coefficient on the MXU: bf16 inputs, f32 accumulate, contraction on
        # the shared last axis (no materialized transpose).  ic store is lane-dense
        # (mr_pad % 128 == 0).
        s = jax.lax.dot_general(u_ref[...], r_ref[...], (((1,), (1,)), ((), ())),
                                preferred_element_type=jnp.float32)   # (tm, mr_pad) f32
        ic_ref[...] = s

        # softmax(dim=1) statistics for `weight`.
        # Padded R rows are exact zeros, so padded columns of s are exactly 0; the
        # unmasked row max is therefore still a valid (shift-invariant) stabilizer.
        row_max = jnp.max(s, axis=1, keepdims=True)
        e = jnp.exp(s - row_max)                                       # EUP, full tile

        if need_col_mask:
            # Mask work is O(tm*128), not O(tm*mr_pad): only the last lane block can
            # contain 128-padding columns.  (Per-type zero-pad rows/cols up to max_size
            # stay unmasked on purpose, matching the PyTorch reference.)
            lane = jax.lax.broadcasted_iota(jnp.int32, (tm, 128), 1) + last
            denom = jnp.sum(jnp.where(lane < n_valid, e[:, last:], 0.0),
                            axis=1, keepdims=True)
            if last > 0:
                denom = denom + jnp.sum(e[:, :last], axis=1, keepdims=True)
        else:
            denom = jnp.sum(e, axis=1, keepdims=True)

        # Per-row weight contribution:
        #   sum_j leaky_relu(softmax(s)[i, j]) == sum_j e_ij / denom_i == denom_i/denom_i
        # (leaky_relu is the identity on the nonnegative softmax).  Computing it as
        # denom * (1/denom) on a (tm, 1) vector removes the full-tile normalize and the
        # second full-tile row reduction; exact reciprocal avoids EUP-approx bias.
        row_w = denom * pl.reciprocal(denom, approx=False)

        if need_row_mask:
            rows = (pl.program_id(0) * tm
                    + jax.lax.broadcasted_iota(jnp.int32, (tm, 1), 0))
            row_w = jnp.where(rows < n_valid, row_w, 0.0)
        w_ref[...] = row_w

    return kernel


def sla_impression_pallas(user_emb, recipe_emb, *, compute_dtype=jnp.bfloat16):
    """user_emb, recipe_emb: (M, D) float32, already row-padded to max_size.

    Returns (impression_coefficient (M, M) float32, weight scalar float32)."""
    M, D = user_emb.shape
    assert recipe_emb.shape == (M, D)

    # Only the ic column (lane) axis needs a 128 multiple for unmasked vst; the row
    # (sublane) axis only needs to be a multiple of the row tile (min 8).
    Mr_pad = _round_up(max(M, 1), 128)

    # Generation-aware budgets (v7x: 64 MiB VMEM per TensorCore; v5e/v6e: 128 MiB).
    try:
        vmem_cap = int(getattr(pltpu.get_tpu_info(), "vmem_capacity_bytes", 64 * 2**20))
    except Exception:
        vmem_cap = 64 * 2**20                      # conservative (v7x-class) fallback
    if vmem_cap <= 64 * 2**20:                     # v7x-class
        ic_tile_budget, vmem_ceiling = 10 * 2**20, 48 * 2**20
    else:                                          # v5e / v6e (128 MiB parts)
        ic_tile_budget, vmem_ceiling = 28 * 2**20, 100 * 2**20

    # Row tile: single tile for small M, otherwise grow 128 -> 512 while the
    # double-buffered (TM, Mr_pad) f32 ic tile stays under budget.
    if M <= 256:
        TM = _round_up(M, 8)
        Mu_pad = TM
    else:
        TM = 128
        while TM * 2 <= 512 and 2 * (TM * 2) * Mr_pad * 4 <= ic_tile_budget:
            TM *= 2
        Mu_pad = _round_up(M, TM)

    # No contraction-dim padding: a block last dim equal to the full array dim (D) is
    # legal and Mosaic handles K < 128 on the MXU — the K-pad only streamed zeros.
    u_p = jnp.pad(user_emb, ((0, Mu_pad - M), (0, 0))).astype(compute_dtype)
    r_p = jnp.pad(recipe_emb, ((0, Mr_pad - M), (0, 0))).astype(compute_dtype)

    # VMEM residency estimate (lane-padded widths), counted once per buffer copy.
    in_bpe = jnp.dtype(compute_dtype).itemsize
    Dv = _round_up(D, 128)
    est_bytes = (2 * TM * Dv * in_bpe              # U row tiles, double-buffered
                 + 2 * Mr_pad * Dv * in_bpe        # resident R (worst case 2 buffers)
                 + 2 * TM * Mr_pad * 4             # ic tiles, double-buffered
                 + 2 * TM * 128 * 4)               # per-row weight tiles
    vmem_limit = int(min(max(est_bytes * 3 // 2 + (2 << 20), 32 * 2**20), vmem_ceiling))

    kernel = _make_sla_kernel(M, TM, Mr_pad, Mu_pad)
    grid = (Mu_pad // TM,)

    def build(single_buffer_r):
        # R's index_map is constant (DMA'd once); Buffered(1) drops its unused second
        # VMEM buffer so larger row tiles fit under the v7x per-TC budget.
        r_kwargs = {"pipeline_mode": pl.Buffered(1)} if single_buffer_r else {}
        return pl.pallas_call(
            kernel,
            out_shape=(
                jax.ShapeDtypeStruct((Mu_pad, Mr_pad), jnp.float32),
                jax.ShapeDtypeStruct((Mu_pad, 1), jnp.float32),
            ),
            grid_spec=pltpu.PrefetchScalarGridSpec(
                num_scalar_prefetch=0,
                grid=grid,
                in_specs=[
                    pl.BlockSpec((TM, D), lambda i: (i, 0)),                 # U row tiles
                    pl.BlockSpec((Mr_pad, D), lambda i: (0, 0), **r_kwargs),  # R resident
                ],
                out_specs=(
                    pl.BlockSpec((TM, Mr_pad), lambda i: (i, 0)),            # ic, lane-dense
                    pl.BlockSpec((TM, 1), lambda i: (i, 0)),                 # weight partials
                ),
            ),
            compiler_params=pltpu.CompilerParams(
                dimension_semantics=("parallel",),   # row axis can shard across v7x's 2 TCs
                vmem_limit_bytes=vmem_limit,
            ),
        )

    # TODO(synk): on v5e, additionally sweep pipeline_mode=pl.Buffered(3) on the ic
    # out_spec to hide exposed writeback at ~0.8 TB/s HBM.
    try:
        ic_p, w_rows = build(single_buffer_r=True)(u_p, r_p)
    except Exception:
        # pipeline_mode=Buffered(1) unsupported by this JAX/Mosaic build -> default buffering.
        ic_p, w_rows = build(single_buffer_r=False)(u_p, r_p)

    impression_coefficient = ic_p[:M, :M]
    weight = jnp.sum(w_rows)                         # tiny (Mu_pad, 1) reduction in XLA
    return impression_coefficient, weight


def sla_forward(params, uid, rid, ing, nut, is_healthy=None):
    """SLA.forward: embedding gather + pad + concat in plain JAX (cheap glue); the
    matmul / softmax / reduction hot path runs in the Pallas kernel."""
    user_emb = params["user"][uid]            # (Lu, D)
    recipe_emb = params["recipe"][rid]        # (Lr, D)
    ingredient_emb = params["ingredient"][ing]
    nutrition_emb = params["nutrition"][nut]

    max_size = max(user_emb.shape[0], recipe_emb.shape[0],
                   ingredient_emb.shape[0], nutrition_emb.shape[0])

    def pad_rows(e):
        return jnp.pad(e, ((0, max_size - e.shape[0]), (0, 0)))

    user_emb = pad_rows(user_emb)
    recipe_emb = pad_rows(recipe_emb)
    ingredient_emb = pad_rows(ingredient_emb)
    nutrition_emb = pad_rows(nutrition_emb)

    node_embeddings = jnp.concatenate(
        [user_emb, recipe_emb, ingredient_emb, nutrition_emb], axis=1)  # (M, 4D)

    impression_coefficient, weight = sla_impression_pallas(user_emb, recipe_emb)
    # NOTE: the `is_healthy` flag / argument does not affect the returned values.
    # TODO(synk): batch many (uid, rid) requests per pallas_call along a leading
    # 'parallel' grid axis — at this toy size a single request is pure launch overhead.
    return node_embeddings, impression_coefficient, weight


def _reference(params, uid, rid, ing, nut, matmul_dtype=jnp.float32):
    """Pure-JAX reference (optionally with the same bf16-input MXU matmul)."""
    u = params["user"][uid]
    r = params["recipe"][rid]
    max_size = max(u.shape[0], r.shape[0],
                   params["ingredient"][ing].shape[0],
                   params["nutrition"][nut].shape[0])
    u = jnp.pad(u, ((0, max_size - u.shape[0]), (0, 0)))
    r = jnp.pad(r, ((0, max_size - r.shape[0]), (0, 0)))
    ic = jax.lax.dot_general(u.astype(matmul_dtype), r.astype(matmul_dtype),
                             (((1,), (1,)), ((), ())),
                             preferred_element_type=jnp.float32)
    sm = jax.nn.softmax(ic, axis=1)
    w = jnp.sum(jnp.where(sm >= 0, sm, 0.01 * sm))
    return ic, w


if __name__ == "__main__":
    key = jax.random.PRNGKey(0)
    num_users, num_recipes, num_ingredients, num_nutrition = 16, 16, 16, 16
    embedding_dim = 32

    k_u, k_r, k_i, k_n, k_idx = jax.random.split(key, 5)
    # nn.Embedding default init: N(0, 1)
    params = {
        "user": jax.random.normal(k_u, (num_users, embedding_dim), jnp.float32),
        "recipe": jax.random.normal(k_r, (num_recipes, embedding_dim), jnp.float32),
        "ingredient": jax.random.normal(k_i, (num_ingredients, embedding_dim), jnp.float32),
        "nutrition": jax.random.normal(k_n, (num_nutrition, embedding_dim), jnp.float32),
    }
    # TODO(synk): the `attention` nn.Sequential in __init__ is unused in forward; omitted.

    ku, kr, ki, kn = jax.random.split(k_idx, 4)
    uid = jax.random.randint(ku, (6,), 0, num_users)
    rid = jax.random.randint(kr, (8,), 0, num_recipes)
    ing = jax.random.randint(ki, (5,), 0, num_ingredients)
    nut = jax.random.randint(kn, (7,), 0, num_nutrition)

    node_embeddings, impression_coefficient, weight = sla_forward(
        params, uid, rid, ing, nut)
    jax.block_until_ready((node_embeddings, impression_coefficient, weight))

    # Kernel check: reference using the same bf16-input / f32-accumulate matmul.
    ic_bf16, _ = _reference(params, uid, rid, ing, nut, matmul_dtype=jnp.bfloat16)
    # Semantic check: the module's f32 math (looser ic tolerance for the bf16 MXU inputs).
    ic_f32, w_f32 = _reference(params, uid, rid, ing, nut, matmul_dtype=jnp.float32)

    assert node_embeddings.shape == (8, 4 * embedding_dim)
    assert impression_coefficient.shape == ic_f32.shape
    assert jnp.allclose(impression_coefficient, ic_bf16, atol=2e-3, rtol=2e-3)
    assert jnp.allclose(impression_coefficient, ic_f32, atol=2.5e-1, rtol=5e-2)
    # weight is analytically max_size (softmax rows sum to 1, leaky_relu is identity);
    # the kernel uses an exact reciprocal so this is tight.
    assert jnp.allclose(weight, w_f32, atol=1e-3, rtol=1e-4)

    print("KERNEL_OK")
</pallas_src>

<mosaic_0001>
module attributes {stable_mosaic.version = 11 : i64} {
  func.func @kernel(%arg0: i32, %arg1: memref<8x32xbf16, #tpu.memory_space<vmem>>, %arg2: memref<128x32xbf16, #tpu.memory_space<vmem>>, %arg3: memref<8x128xf32, #tpu.memory_space<vmem>>, %arg4: memref<8x1xf32, #tpu.memory_space<vmem>>) attributes {dimension_semantics = [#tpu.dimension_semantics<parallel>], iteration_bounds = array<i64: 1>, scalar_prefetch = 0 : i64, scratch_operands = 0 : i64, tpu.core_type = #tpu.core_type<tc>, window_params = [{transform_indices = @transform_0, window_bounds = array<i64: 8, 32>}, {pipeline_mode = #tpu.pipeline_mode<synchronous>, transform_indices = @transform_1, window_bounds = array<i64: 128, 32>}, {transform_indices = @transform_2, window_bounds = array<i64: 8, 128>}, {transform_indices = @transform_3, window_bounds = array<i64: 8, 1>}]} {
    %c0 = arith.constant 0 : index
    %c0_0 = arith.constant 0 : index
    %0 = vector.load %arg1[%c0, %c0_0] : memref<8x32xbf16, #tpu.memory_space<vmem>>, vector<8x32xbf16>
    %c0_1 = arith.constant 0 : index
    %c0_2 = arith.constant 0 : index
    %1 = vector.load %arg2[%c0_1, %c0_2] : memref<128x32xbf16, #tpu.memory_space<vmem>>, vector<128x32xbf16>
    %cst = arith.constant dense<0.000000e+00> : vector<8x128xf32>
    %2 = tpu.matmul %0, %1, %cst {dimension_numbers = #tpu.dot_dimension_numbers<[1], [1], [0], [0], [0, 0, 1, 0], [], []>} : vector<8x32xbf16>, vector<128x32xbf16>, vector<8x128xf32> -> vector<8x128xf32>
    %c0_3 = arith.constant 0 : index
    %c0_4 = arith.constant 0 : index
    %3 = vector.load %arg3[%c0_3, %c0_4] : memref<8x128xf32, #tpu.memory_space<vmem>>, vector<8x128xf32>
    tpu.vector_store %arg3[%c0_3, %c0_4], %2 {strides = array<i32>} : memref<8x128xf32, #tpu.memory_space<vmem>>, vector<8x128xf32>,
    %cst_5 = arith.constant dense<0xFF800000> : vector<8xf32>
    %4 = vector.multi_reduction <maximumf>, %2, %cst_5 [1] : vector<8x128xf32> to vector<8xf32>
    %5 = vector.shape_cast %4 : vector<8xf32> to vector<8x1xf32>
    %6 = vector.broadcast %5 : vector<8x1xf32> to vector<8x128xf32>
    %7 = arith.subf %2, %6 : vector<8x128xf32>
    %8 = math.exp %7 : vector<8x128xf32>
    %9 = tpu.iota {dimensions = array<i32: 1>} : vector<8x128xi32>
    %c0_i32 = arith.constant 0 : i32
    %10 = vector.broadcast %c0_i32 : i32 to vector<8x128xi32>
    %11 = arith.addi %9, %10 : vector<8x128xi32>
    %c8_i32 = arith.constant 8 : i32
    %12 = vector.broadcast %c8_i32 : i32 to vector<8x128xi32>
    %13 = arith.cmpi slt, %11, %12 : vector<8x128xi32>
    %cst_6 = arith.constant 0.000000e+00 : f32
    %14 = vector.broadcast %cst_6 : f32 to vector<8x128xf32>
    %15 = arith.select %13, %8, %14 : vector<8x128xi1>, vector<8x128xf32>
    %cst_7 = arith.constant dense<0.000000e+00> : vector<8xf32>
    %16 = vector.multi_reduction <add>, %15, %cst_7 [1] : vector<8x128xf32> to vector<8xf32>
    %17 = vector.shape_cast %16 : vector<8xf32> to vector<8x1xf32>
    %18 = tpu.reciprocal %17 : vector<8x1xf32> -> vector<8x1xf32>
    %19 = arith.mulf %17, %18 : vector<8x1xf32>
    %c0_8 = arith.constant 0 : index
    %c0_9 = arith.constant 0 : index
    %20 = vector.load %arg4[%c0_8, %c0_9] : memref<8x1xf32, #tpu.memory_space<vmem>>, vector<8x1xf32>
    tpu.vector_store %arg4[%c0_8, %c0_9], %19 {strides = array<i32>} : memref<8x1xf32, #tpu.memory_space<vmem>>, vector<8x1xf32>,
    return
  }
  func.func @transform_0(%arg0: i32) -> (i32, i32) {
    %c0_i32 = arith.constant 0 : i32
    %c0_i32_0 = arith.constant 0 : i32
    return %arg0, %c0_i32 : i32, i32
  }
  func.func @transform_1(%arg0: i32) -> (i32, i32) {
    %c0_i32 = arith.constant 0 : i32
    %c0_i32_0 = arith.constant 0 : i32
    %c0_i32_1 = arith.constant 0 : i32
    return %c0_i32, %c0_i32_0 : i32, i32
  }
  func.func @transform_2(%arg0: i32) -> (i32, i32) {
    %c0_i32 = arith.constant 0 : i32
    %c0_i32_0 = arith.constant 0 : i32
    return %arg0, %c0_i32 : i32, i32
  }
  func.func @transform_3(%arg0: i32) -> (i32, i32) {
    %c0_i32 = arith.constant 0 : i32
    %c0_i32_0 = arith.constant 0 : i32
    return %arg0, %c0_i32 : i32, i32
  }
}

module attributes {stable_mosaic.version = 11 : i64} {
  func.func @kernel(%arg0: i32, %arg1: memref<8x32xbf16, #tpu.memory_space<vmem>>, %arg2: memref<128x32xbf16, #tpu.memory_space<vmem>>, %arg3: memref<8x128xf32, #tpu.memory_space<vmem>>, %arg4: memref<8x1xf32, #tpu.memory_space<vmem>>) attributes {dimension_semantics = [#tpu.dimension_semantics<parallel>], iteration_bounds = array<i64: 1>, scalar_prefetch = 0 : i64, scratch_operands = 0 : i64, tpu.core_type = #tpu.core_type<tc>, window_params = [{transform_indices = @transform_0, window_bounds = array<i64: 8, 32>}, {pipeline_mode = #tpu.pipeline_mode<synchronous>, transform_indices = @transform_1, window_bounds = array<i64: 128, 32>}, {transform_indices = @transform_2, window_bounds = array<i64: 8, 128>}, {transform_indices = @transform_3, window_bounds = array<i64: 8, 1>}]} {
    %c0 = arith.constant 0 : index
    %c0_0 = arith.constant 0 : index
    %0 = vector.load %arg1[%c0, %c0_0] : memref<8x32xbf16, #tpu.memory_space<vmem>>, vector<8x32xbf16>
    %c0_1 = arith.constant 0 : index
    %c0_2 = arith.constant 0 : index
    %1 = vector.load %arg2[%c0_1, %c0_2] : memref<128x32xbf16, #tpu.memory_space<vmem>>, vector<128x32xbf16>
    %cst = arith.constant dense<0.000000e+00> : vector<8x128xf32>
    %2 = tpu.matmul %0, %1, %cst {dimension_numbers = #tpu.dot_dimension_numbers<[1], [1], [0], [0], [0, 0, 1, 0], [], []>} : vector<8x32xbf16>, vector<128x32xbf16>, vector<8x128xf32> -> vector<8x128xf32>
    %c0_3 = arith.constant 0 : index
    %c0_4 = arith.constant 0 : index
    %3 = vector.load %arg3[%c0_3, %c0_4] : memref<8x128xf32, #tpu.memory_space<vmem>>, vector<8x128xf32>
    tpu.vector_store %arg3[%c0_3, %c0_4], %2 {strides = array<i32>} : memref<8x128xf32, #tpu.memory_space<vmem>>, vector<8x128xf32>,
    %cst_5 = arith.constant dense<0xFF800000> : vector<8xf32>
    %4 = vector.multi_reduction <maximumf>, %2, %cst_5 [1] : vector<8x128xf32> to vector<8xf32>
    %5 = vector.shape_cast %4 : vector<8xf32> to vector<8x1xf32>
    %6 = vector.broadcast %5 : vector<8x1xf32> to vector<8x128xf32>
    %7 = arith.subf %2, %6 : vector<8x128xf32>
    %8 = math.exp %7 : vector<8x128xf32>
    %9 = tpu.iota {dimensions = array<i32: 1>} : vector<8x128xi32>
    %c0_i32 = arith.constant 0 : i32
    %10 = vector.broadcast %c0_i32 : i32 to vector<8x128xi32>
    %11 = arith.addi %9, %10 : vector<8x128xi32>
    %c8_i32 = arith.constant 8 : i32
    %12 = vector.broadcast %c8_i32 : i32 to vector<8x128xi32>
    %13 = arith.cmpi slt, %11, %12 : vector<8x128xi32>
    %cst_6 = arith.constant 0.000000e+00 : f32
    %14 = vector.broadcast %cst_6 : f32 to vector<8x128xf32>
    %15 = arith.select %13, %8, %14 : vector<8x128xi1>, vector<8x128xf32>
    %cst_7 = arith.constant dense<0.000000e+00> : vector<8xf32>
    %16 = vector.multi_reduction <add>, %15, %cst_7 [1] : vector<8x128xf32> to vector<8xf32>
    %17 = vector.shape_cast %16 : vector<8xf32> to vector<8x1xf32>
    %18 = tpu.reciprocal %17 : vector<8x1xf32> -> vector<8x1xf32>
    %19 = arith.mulf %17, %18 : vector<8x1xf32>
    %c0_8 = arith.constant 0 : index
    %c0_9 = arith.constant 0 : index
    %20 = vector.load %arg4[%c0_8, %c0_9] : memref<8x1xf32, #tpu.memory_space<vmem>>, vector<8x1xf32>
    tpu.vector_store %arg4[%c0_8, %c0_9], %19 {strides = array<i32>} : memref<8x1xf32, #tpu.memory_space<vmem>>, vector<8x1xf32>,
    return
  }
  func.func @transform_0(%arg0: i32) -> (i32, i32) {
    %c0_i32 = arith.constant 0 : i32
    %c0_i32_0 = arith.constant 0 : i32
    return %arg0, %c0_i32 : i32, i32
  }
  func.func @transform_1(%arg0: i32) -> (i32, i32) {
    %c0_i32 = arith.constant 0 : i32
    %c0_i32_0 = arith.constant 0 : i32
    %c0_i32_1 = arith.constant 0 : i32
    return %c0_i32, %c0_i32_0 : i32, i32
  }
  func.func @transform_2(%arg0: i32) -> (i32, i32) {
    %c0_i32 = arith.constant 0 : i32
    %c0_i32_0 = arith.constant 0 : i32
    return %arg0, %c0_i32 : i32, i32
  }
  func.func @transform_3(%arg0: i32) -> (i32, i32) {
    %c0_i32 = arith.constant 0 : i32
    %c0_i32_0 = arith.constant 0 : i32
    return %arg0, %c0_i32 : i32, i32
  }
}

</mosaic_0001>

<bundles_post_ra>
// kernel: tpu_custom_call.1
= control target key start
LH: loop header
LB: loop body
LE: loop exit
PB: predicated region body
PF: predicated region fallthrough
CT: control target
= control target key end

     0   :  { %v251_v1 = vmov 0.0   ;;  %vm72_vm0 = vcmask 261120   ;;  %s325_s0 = inlined_call_operand.vmem [shape: bf16[8,32], index: 0, kind: input, shape index: {}]   ;;  %s326_s1 = inlined_call_operand.vmem [shape: bf16[128,32], index: 1, kind: input, shape index: {}]   ;;  %s327_s2 = inlined_call_operand.hbm [shape: f32[8,128], index: 2, kind: output, shape index: {0}]   ;;  %s328_s3 = inlined_call_operand.vmem [shape: f32[8,1], index: 3, kind: output, shape index: {1}]  }
   0x1   :  { %v215_v0 = vld [vmem:[%s326_s1] sm:$0xff]   ;;  %192 = vmatprep.subr.bf16.mxu0 %v251_v1  ;;  %v216_v3 = vld [vmem:[%s326_s1 + $0x8] sm:$0xff]  }
   0x2   :  { %v77_v2 = vsel %vm72_vm0, %v215_v0, 0  ;;  %v80_v4 = vsel %vm72_vm0, %v216_v3, 0 }
   0x3   :  { %193 = vmatpush3.bf16.xpose.msra.mxu0 %v77_v2 }
   0x4   :  { %194 = vmatprep.subr.bf16.mxu0 %v251_v1 }
   0x5   :  { %9 = vsyncpa [#allocation3], 0  ;;  %vm252_vm1 = vmmov 0   ;;  %v217_v5 = vld [vmem:[%s326_s1 + $0x10] sm:$0xff]   ;;  %v218_v7 = vld [vmem:[%s326_s1 + $0x18] sm:$0xff]   ;;  %v146_v25 = vlaneseq }
   0x6   :  { %208 = vmatprep.mubr.msk.bf16.mxu0 %vm252_vm1, %v251_v1  ;;  %v83_v6 = vsel %vm72_vm0, %v217_v5, 0  ;;  %v86_v8 = vsel %vm72_vm0, %v218_v7, 0  ;;  %v219_v9 = vld [vmem:[%s326_s1 + $0x20] sm:$0xff]   ;;  %v220_v11 = vld [vmem:[%s326_s1 + $0x28] sm:$0xff]   ;;  %v221_v13 = vld [vmem:[%s326_s1 + $0x30] sm:$0xff]  }
   0x7   :  { %v89_v10 = vsel %vm72_vm0, %v219_v9, 0  ;;  %v92_v12 = vsel %vm72_vm0, %v220_v11, 0  ;;  %v95_v14 = vsel %vm72_vm0, %v221_v13, 0  ;;  %v222_v15 = vld [vmem:[%s326_s1 + $0x38] sm:$0xff]   ;;  %v15_v17 = vld [vmem:[%s325_s0] sm:$0xf] }
   0x8   :  { %v98_v16 = vsel %vm72_vm0, %v222_v15, 0  ;;  %v147_v26 = vand.u32 127, %v146_v25  ;;  %s253_s1 = smov [#allocation2]  }
   0x9   :  { %s162_s0 = sshll.u32 %s253_s1, 4  ;;  %s163_s0 = int_to_ptr.vmem [resolvable:$true] %s162_s0 }
   0xa   :  { %vm148_vm2 = vcmp.lt.s32.totalorder %v147_v26, 8  ;;  %s227_s30 = scalar_lea.vmem %s163_s0, 128  ;;  %p232_p1 = scmp.lt.s32.totalorder %s163_s0, %s163_s0 }
   0xb   :  { %195 = vmatpush3.bf16.xpose.msra.mxu0 %v80_v4  ;;  %p228_p0 = scmp.ne.s32.totalorder %s163_s0, %s227_s30  ;;  %p233_p2 = scmp.lt.s32.totalorder %s227_s30, %s227_s30 }
   0xc   :  { %196 = vmatprep.subr.bf16.mxu0 %v251_v1 }
   0xd   :  { %p234_p3 = por %p233_p2, %p232_p1 }
   0xf   :  { %p235_p4 = pnand %p234_p3, %p228_p0 }
  0x13   :  { %197 = vmatpush3.bf16.xpose.msra.mxu0 %v83_v6 }
  0x14   :  { %198 = vmatprep.subr.bf16.mxu0 %v251_v1 }
  0x1b   :  { %199 = vmatpush3.bf16.xpose.msra.mxu0 %v86_v8 }
  0x1c   :  { %200 = vmatprep.subr.bf16.mxu0 %v251_v1 }
  0x23   :  { %201 = vmatpush3.bf16.xpose.msra.mxu0 %v89_v10 }
  0x24   :  { %202 = vmatprep.subr.bf16.mxu0 %v251_v1 }
  0x2b   :  { %203 = vmatpush3.bf16.xpose.msra.mxu0 %v92_v12 }
  0x2c   :  { %204 = vmatprep.subr.bf16.mxu0 %v251_v1 }
  0x33   :  { %205 = vmatpush3.bf16.xpose.msra.mxu0 %v95_v14 }
  0x34   :  { %206 = vmatprep.subr.bf16.mxu0 %v251_v1 }
  0x3b   :  { %207 = vmatpush3.bf16.xpose.msra.mxu0 %v98_v16 }
  0x42   :  { %209 = vmatmul.mubr.msk.bf16.vlgmr.msra.gmra.mrb[0].mxu0 %vm72_vm0, %v15_v17 }
 0x115   :  { %v134_v18 = vpop.f32.mrb[0].mxu0 }
 0x116   :  { %140 = vst [vmem:[#allocation2] sm:$0xff] %v134_v18  ;;  %141 = vmax.xlane.f32.xlu0 %v134_v18  ;;  %v210_v19 = vpop.f32.mrb[1].mxu0 }
 0x117   :  { %v137_v20 = vpop.f32.mrb[2].mxu0 }
 0x118   :  { %v211_v21 = vpop.f32.mrb[3].mxu0 }
 0x1a3   :  { %v142_v22 = vpop.xlane.xlu0 %141 }
 0x1a4   :  { %v143_v23 = vsub.f32 %v134_v18, %v142_v22 }
 0x1a6   :  { %v144_v24 = vmul.f32 1.442695, %v143_v23 }
 0x1a8   :  { %223 = vpow2.f32 %v144_v24 }
 0x1b2   :  { %v224_v27 = vpop.eup %223 }
 0x1b3   :  { %v149_v28 = vsel %vm148_vm2, %v224_v27, 0.0 }
 0x1b4   :  { %150 = vadd.xlane.f32.xlu0 %v149_v28 }
 0x1b5   :  { %238 = shalt.err (!%p235_p4)
}
 0x1b6   :  { %s239_s6 = scalar_lea.hbm %s327_s2, 128 }
 0x1b7   :  { %p240_p5 = scmp.ne.s32.totalorder %s327_s2, %s239_s6  ;;  %p243_p6 = scmp.lt.u32.totalorder %s239_s6, %s327_s2 }
 0x1b9   :  { %p245_p7 = pnand %p243_p6, %p240_p5 }
 0x1bb   :  { %248 = shalt.err (!%p245_p7)
}
 0x1bc   :  { %165 = dma.vmem_to_hbm [thread:$0]  %s163_s0, 128, %s327_s2, [#allocation3]   ;;  %vm154_vm3 = vcmask 7168  }
 0x241   :  { %v151_v29 = vpop.xlane.xlu0 %150 }
 0x242   :  { %225 = vrcp.f32 %v151_v29 }
 0x24c   :  { %v226_v30 = vpop.eup %225 }
 0x24d   :  { %v153_v31 = vmul.f32 %v226_v30, %v151_v29 }
 0x24f   :  { %155 = vst.msk [vmem:[%s328_s3] sm:$0xff] %vm154_vm3, %v153_v31 }
 0x250   :  { %249 = dma.done.wait [#allocation3], 128  }
 0x251   :  { %250 = vsyncadd [#allocation3], 4294967168 }
 0x252   :  { %173 = vsyncpa [#allocation3], 1 }

// kernel: tpu_custom_call.1
= control target key start
LH: loop header
LB: loop body
LE: loop exit
PB: predicated region body
PF: predicated region fallthrough
CT: control target
= control target key end

     0   :  { %v251_v1 = vmov 0.0   ;;  %vm72_vm0 = vcmask 261120   ;;  %s325_s0 = inlined_call_operand.vmem [shape: bf16[8,32], index: 0, kind: input, shape index: {}]   ;;  %s326_s1 = inlined_call_operand.vmem [shape: bf16[128,32], index: 1, kind: input, shape index: {}]   ;;  %s327_s2 = inlined_call_operand.hbm [shape: f32[8,128], index: 2, kind: output, shape index: {0}]   ;;  %s328_s3 = inlined_call_operand.vmem [shape: f32[8,1], index: 3, kind: output, shape index: {1}]  }
   0x1   :  { %v215_v0 = vld [vmem:[%s326_s1] sm:$0xff]   ;;  %192 = vmatprep.subr.bf16.mxu0 %v251_v1  ;;  %v216_v3 = vld [vmem:[%s326_s1 + $0x8] sm:$0xff]  }
   0x2   :  { %v77_v2 = vsel %vm72_vm0, %v215_v0, 0  ;;  %v80_v4 = vsel %vm72_vm0, %v216_v3, 0 }
   0x3   :  { %193 = vmatpush3.bf16.xpose.msra.mxu0 %v77_v2 }
   0x4   :  { %194 = vmatprep.subr.bf16.mxu0 %v251_v1 }
   0x5   :  { %9 = vsyncpa [#allocation3], 0  ;;  %vm252_vm1 = vmmov 0   ;;  %v217_v5 = vld [vmem:[%s326_s1 + $0x10] sm:$0xff]   ;;  %v218_v7 = vld [vmem:[%s326_s1 + $0x18] sm:$0xff]   ;;  %v146_v25 = vlaneseq }
   0x6   :  { %208 = vmatprep.mubr.msk.bf16.mxu0 %vm252_vm1, %v251_v1  ;;  %v83_v6 = vsel %vm72_vm0, %v217_v5, 0  ;;  %v86_v8 = vsel %vm72_vm0, %v218_v7, 0  ;;  %v219_v9 = vld [vmem:[%s326_s1 + $0x20] sm:$0xff]   ;;  %v220_v11 = vld [vmem:[%s326_s1 + $0x28] sm:$0xff]   ;;  %v221_v13 = vld [vmem:[%s326_s1 + $0x30] sm:$0xff]  }
   0x7   :  { %v89_v10 = vsel %vm72_vm0, %v219_v9, 0  ;;  %v92_v12 = vsel %vm72_vm0, %v220_v11, 0  ;;  %v95_v14 = vsel %vm72_vm0, %v221_v13, 0  ;;  %v222_v15 = vld [vmem:[%s326_s1 + $0x38] sm:$0xff]   ;;  %v15_v17 = vld [vmem:[%s325_s0] sm:$0xf] }
   0x8   :  { %v98_v16 = vsel %vm72_vm0, %v222_v15, 0  ;;  %v147_v26 = vand.u32 127, %v146_v25  ;;  %s253_s1 = smov [#allocation2]  }
   0x9   :  { %s162_s0 = sshll.u32 %s253_s1, 4  ;;  %s163_s0 = int_to_ptr.vmem [resolvable:$true] %s162_s0 }
   0xa   :  { %vm148_vm2 = vcmp.lt.s32.totalorder %v147_v26, 8  ;;  %s227_s30 = scalar_lea.vmem %s163_s0, 128  ;;  %p232_p1 = scmp.lt.s32.totalorder %s163_s0, %s163_s0 }
   0xb   :  { %195 = vmatpush3.bf16.xpose.msra.mxu0 %v80_v4  ;;  %p228_p0 = scmp.ne.s32.totalorder %s163_s0, %s227_s30  ;;  %p233_p2 = scmp.lt.s32.totalorder %s227_s30, %s227_s30 }
   0xc   :  { %196 = vmatprep.subr.bf16.mxu0 %v251_v1 }
   0xd   :  { %p234_p3 = por %p233_p2, %p232_p1 }
   0xf   :  { %p235_p4 = pnand %p234_p3, %p228_p0 }
  0x13   :  { %197 = vmatpush3.bf16.xpose.msra.mxu0 %v83_v6 }
  0x14   :  { %198 = vmatprep.subr.bf16.mxu0 %v251_v1 }
  0x1b   :  { %199 = vmatpush3.bf16.xpose.msra.mxu0 %v86_v8 }
  0x1c   :  { %200 = vmatprep.subr.bf16.mxu0 %v251_v1 }
  0x23   :  { %201 = vmatpush3.bf16.xpose.msra.mxu0 %v89_v10 }
  0x24   :  { %202 = vmatprep.subr.bf16.mxu0 %v251_v1 }
  0x2b   :  { %203 = vmatpush3.bf16.xpose.msra.mxu0 %v92_v12 }
  0x2c   :  { %204 = vmatprep.subr.bf16.mxu0 %v251_v1 }
  0x33   :  { %205 = vmatpush3.bf16.xpose.msra.mxu0 %v95_v14 }
  0x34   :  { %206 = vmatprep.subr.bf16.mxu0 %v251_v1 }
  0x3b   :  { %207 = vmatpush3.bf16.xpose.msra.mxu0 %v98_v16 }
  0x42   :  { %209 = vmatmul.mubr.msk.bf16.vlgmr.msra.gmra.mrb[0].mxu0 %vm72_vm0, %v15_v17 }
 0x115   :  { %v134_v18 = vpop.f32.mrb[0].mxu0 }
 0x116   :  { %140 = vst [vmem:[#allocation2] sm:$0xff] %v134_v18  ;;  %141 = vmax.xlane.f32.xlu0 %v134_v18  ;;  %v210_v19 = vpop.f32.mrb[1].mxu0 }
 0x117   :  { %v137_v20 = vpop.f32.mrb[2].mxu0 }
 0x118   :  { %v211_v21 = vpop.f32.mrb[3].mxu0 }
 0x1a3   :  { %v142_v22 = vpop.xlane.xlu0 %141 }
 0x1a4   :  { %v143_v23 = vsub.f32 %v134_v18, %v142_v22 }
 0x1a6   :  { %v144_v24 = vmul.f32 1.442695, %v143_v23 }
 0x1a8   :  { %223 = vpow2.f32 %v144_v24 }
 0x1b2   :  { %v224_v27 = vpop.eup %223 }
 0x1b3   :  { %v149_v28 = vsel %vm148_vm2, %v224_v27, 0.0 }
 0x1b4   :  { %150 = vadd.xlane.f32.xlu0 %v149_v28 }
 0x1b5   :  { %238 = shalt.err (!%p235_p4)
}
 0x1b6   :  { %s239_s6 = scalar_lea.hbm %s327_s2, 128 }
 0x1b7   :  { %p240_p5 = scmp.ne.s32.totalorder %s327_s2, %s239_s6  ;;  %p243_p6 = scmp.lt.u32.totalorder %s239_s6, %s327_s2 }
 0x1b9   :  { %p245_p7 = pnand %p243_p6, %p240_p5 }
 0x1bb   :  { %248 = shalt.err (!%p245_p7)
}
 0x1bc   :  { %165 = dma.vmem_to_hbm [thread:$0]  %s163_s0, 128, %s327_s2, [#allocation3]   ;;  %vm154_vm3 = vcmask 7168  }
 0x241   :  { %v151_v29 = vpop.xlane.xlu0 %150 }
 0x242   :  { %225 = vrcp.f32 %v151_v29 }
 0x24c   :  { %v226_v30 = vpop.eup %225 }
 0x24d   :  { %v153_v31 = vmul.f32 %v226_v30, %v151_v29 }
 0x24f   :  { %155 = vst.msk [vmem:[%s328_s3] sm:$0xff] %vm154_vm3, %v153_v31 }
 0x250   :  { %249 = dma.done.wait [#allocation3], 128  }
 0x251   :  { %250 = vsyncadd [#allocation3], 4294967168 }
 0x252   :  { %173 = vsyncpa [#allocation3], 1 }

</bundles_post_ra>
